<compile_context>
chip_gen: v7x
topology: tpu7x:2x2x1
jax: 0.10.0
libtpu: 0.0.40
codegen_flags: <defaults>
</compile_context>

<pallas_src>
import jax
import jax.numpy as jnp
from jax.experimental import pallas as pl
from jax.experimental.pallas import tpu as pltpu


def _unnormalize_kernel(x_ref, std_ref, mean_ref, o_ref):
    # x_ref / o_ref: (tile_r, tile_l) VMEM tiles.
    # std_ref / mean_ref: (tile_r, 1) (layout A, lane-broadcast) or
    #                     (1, tile_l) (layout B, sublane-broadcast).
    # Single VPU FMA per vreg; the op is HBM-bound so compute has huge slack.
    o_ref[...] = x_ref[...] * std_ref[...] + mean_ref[...]


def unnormalize(x, mean, std):
    """x: (N, C, H, W); mean, std: (C,)-broadcastable. Returns x*std[c]+mean[c]."""
    N, C, H, W = x.shape
    dtype = x.dtype
    itemsize = jnp.dtype(dtype).itemsize
    sublane = max(8, 32 // itemsize)   # 8 for f32, 16 for bf16, 32 for int8/fp8
    LANE = 128
    plane = H * W

    # ---- layout selection (lane-dense output is the biggest single lever) ----
    if plane >= LANE and plane % LANE == 0:
        # Layout A: one row per (n, c); lanes = flattened image plane.
        R, L = N * C, plane
        x2 = x.reshape(R, L)
        s2 = jnp.tile(std.reshape(-1).astype(dtype), N).reshape(R, 1)
        m2 = jnp.tile(mean.reshape(-1).astype(dtype), N).reshape(R, 1)
        per_row = True
    else:
        # Layout B: one row per batch element; lanes = C*H*W with per-lane
        # scale/shift vectors (std[c] repeated H*W times).
        R, L = N, C * plane
        x2 = x.reshape(R, L)
        s2 = jnp.repeat(std.reshape(-1).astype(dtype), plane).reshape(1, L)
        m2 = jnp.repeat(mean.reshape(-1).astype(dtype), plane).reshape(1, L)
        per_row = False

    # ---- tile sizing ---------------------------------------------------------
    target_tile_bytes = 2 * 1024 * 1024  # flat region of measured roofline curve

    # Lane tiling: take the full L when a minimum-height tile fits, otherwise a
    # multiple of 128 (caps VMEM for huge planes).
    if L * itemsize * sublane <= target_tile_bytes or L <= LANE:
        tile_l = L
    else:
        tile_l = max(LANE,
                     (target_tile_bytes // (itemsize * sublane)) // LANE * LANE)
        tile_l = min(tile_l, L)

    # Row tiling: fill the remaining budget, rounded down to the sublane multiple.
    rows_fit = max(sublane,
                   (target_tile_bytes // max(1, tile_l * itemsize))
                   // sublane * sublane)
    tile_r = min(R, rows_fit)

    # Guarantee >= 2 grid steps for non-trivial sizes so the row axis can be
    # sharded across v7x's 2 TensorCores; the ~0.35 us per-step overhead is
    # negligible against >= 1 MiB of HBM traffic on single-TC chips.
    total_bytes = R * L * itemsize
    if (pl.cdiv(R, tile_r) * pl.cdiv(L, tile_l) == 1
            and total_bytes >= 1 * 1024 * 1024
            and R >= 2 * sublane):
        tile_r = min(R, max(sublane,
                            (((R + 1) // 2) + sublane - 1) // sublane * sublane))

    grid = (pl.cdiv(R, tile_r), pl.cdiv(L, tile_l))

    if per_row:
        # Index map ignores the lane step -> scale/shift blocks are fetched only
        # when the row block changes (no tiny DMA on every grid step).
        sm_spec = pl.BlockSpec((tile_r, 1), lambda i, j: (i, 0))
    else:
        sm_spec = pl.BlockSpec((1, tile_l), lambda i, j: (0, j))

    cost = pl.CostEstimate(
        flops=2 * R * L,
        transcendentals=0,
        bytes_accessed=2 * R * L * itemsize + 2 * s2.size * itemsize,
    )

    out2 = pl.pallas_call(
        _unnormalize_kernel,
        out_shape=jax.ShapeDtypeStruct((R, L), dtype),
        grid=grid,
        in_specs=[
            pl.BlockSpec((tile_r, tile_l), lambda i, j: (i, j)),
            sm_spec,
            sm_spec,
        ],
        out_specs=pl.BlockSpec((tile_r, tile_l), lambda i, j: (i, j)),
        compiler_params=pltpu.CompilerParams(
            # Row axis parallel (megacore / v7x 2-TC sharding); lane axis
            # inner-serial so scale/shift re-fetches are skipped.
            dimension_semantics=("parallel", "arbitrary"),
            # 48 MiB: above v5e's 16 MiB scoped default (needed for large
            # tiles there), comfortably below v7x's 64 MiB physical VMEM so
            # Mosaic scratch / semaphores keep headroom.
            vmem_limit_bytes=48 * 1024 * 1024,
        ),
        cost_estimate=cost,
    )(x2, s2, m2)

    return out2.reshape(N, C, H, W)


if __name__ == "__main__":
    key = jax.random.PRNGKey(0)
    kx, km, ks = jax.random.split(key, 3)

    N, C, H, W = 2, 4, 16, 16
    x = jax.random.normal(kx, (N, C, H, W), dtype=jnp.float32)
    # Deterministic "normalization" parameters (mirrors mean.view(-1,1,1)).
    mean = jax.random.uniform(km, (C,), dtype=jnp.float32)
    std = jax.random.uniform(ks, (C,), dtype=jnp.float32) + 0.5

    out = unnormalize(x, mean, std)
    out = jax.block_until_ready(out)

    # Reference: tensor * std.view(-1,1,1) + mean.view(-1,1,1)
    ref = x * std[None, :, None, None] + mean[None, :, None, None]
    assert jnp.allclose(out, ref, atol=1e-6), "mismatch vs reference"

    print("KERNEL_OK")
</pallas_src>

<mosaic_0001>
module attributes {stable_mosaic.version = 11 : i64} {
  func.func @_unnormalize_kernel(%arg0: i32, %arg1: i32, %arg2: memref<8x256xf32, #tpu.memory_space<vmem>>, %arg3: memref<8x1xf32, #tpu.memory_space<vmem>>, %arg4: memref<8x1xf32, #tpu.memory_space<vmem>>, %arg5: memref<8x256xf32, #tpu.memory_space<vmem>>) attributes {dimension_semantics = [#tpu.dimension_semantics<parallel>, #tpu.dimension_semantics<arbitrary>], iteration_bounds = array<i64: 1, 1>, scalar_prefetch = 0 : i64, scratch_operands = 0 : i64, tpu.core_type = #tpu.core_type<tc>, window_params = [{transform_indices = @transform_0, window_bounds = array<i64: 8, 256>}, {transform_indices = @transform_1, window_bounds = array<i64: 8, 1>}, {transform_indices = @transform_2, window_bounds = array<i64: 8, 1>}, {transform_indices = @transform_3, window_bounds = array<i64: 8, 256>}]} {
    %c0 = arith.constant 0 : index
    %c0_0 = arith.constant 0 : index
    %0 = vector.load %arg2[%c0, %c0_0] : memref<8x256xf32, #tpu.memory_space<vmem>>, vector<8x256xf32>
    %c0_1 = arith.constant 0 : index
    %c0_2 = arith.constant 0 : index
    %1 = vector.load %arg3[%c0_1, %c0_2] : memref<8x1xf32, #tpu.memory_space<vmem>>, vector<8x1xf32>
    %2 = vector.broadcast %1 : vector<8x1xf32> to vector<8x256xf32>
    %3 = arith.mulf %0, %2 : vector<8x256xf32>
    %c0_3 = arith.constant 0 : index
    %c0_4 = arith.constant 0 : index
    %4 = vector.load %arg4[%c0_3, %c0_4] : memref<8x1xf32, #tpu.memory_space<vmem>>, vector<8x1xf32>
    %5 = vector.broadcast %4 : vector<8x1xf32> to vector<8x256xf32>
    %6 = arith.addf %3, %5 : vector<8x256xf32>
    %c0_5 = arith.constant 0 : index
    %c0_6 = arith.constant 0 : index
    %7 = vector.load %arg5[%c0_5, %c0_6] : memref<8x256xf32, #tpu.memory_space<vmem>>, vector<8x256xf32>
    tpu.vector_store %arg5[%c0_5, %c0_6], %6 {strides = array<i32>} : memref<8x256xf32, #tpu.memory_space<vmem>>, vector<8x256xf32>,
    return
  }
  func.func @transform_0(%arg0: i32, %arg1: i32) -> (i32, i32) {
    %c0_i32 = arith.constant 0 : i32
    return %arg0, %arg1 : i32, i32
  }
  func.func @transform_1(%arg0: i32, %arg1: i32) -> (i32, i32) {
    %c0_i32 = arith.constant 0 : i32
    %c0_i32_0 = arith.constant 0 : i32
    return %arg0, %c0_i32 : i32, i32
  }
  func.func @transform_2(%arg0: i32, %arg1: i32) -> (i32, i32) {
    %c0_i32 = arith.constant 0 : i32
    %c0_i32_0 = arith.constant 0 : i32
    return %arg0, %c0_i32 : i32, i32
  }
  func.func @transform_3(%arg0: i32, %arg1: i32) -> (i32, i32) {
    %c0_i32 = arith.constant 0 : i32
    return %arg0, %arg1 : i32, i32
  }
}

</mosaic_0001>

<bundles_post_ra>
// kernel: tpu_custom_call.1
= control target key start
LH: loop header
LB: loop body
LE: loop exit
PB: predicated region body
PF: predicated region fallthrough
CT: control target
= control target key end

     0   :  { %s122_s0 = inlined_call_operand.vmem [shape: f32[8,256], index: 0, kind: input, shape index: {}]   ;;  %s123_s1 = inlined_call_operand.vmem [shape: f32[8,1], index: 1, kind: input, shape index: {}]   ;;  %s124_s2 = inlined_call_operand.vmem [shape: f32[8,1], index: 2, kind: input, shape index: {}]   ;;  %s125_s3 = inlined_call_operand.hbm [shape: f32[8,256], index: 3, kind: output, shape index: {}]  }
   0x1   :  { %v17_v0 = vld [vmem:[%s123_s1] sm:$0xff] }
   0x2   :  { %8 = vsyncpa [#allocation3], 0  ;;  %v76_v1 = vmov 0   ;;  %v25_v2 = vld [vmem:[%s124_s2] sm:$0xff]  ;;  %v16_v5 = vld [vmem:[%s122_s0 + $0x8] sm:$0xff]  ;;  %s77_s20 = smov [#allocation2]  }
   0x3   :  { %51 = vset.pattern.permute.xlu0 %v76_v1  ;;  %v15_v4 = vld [vmem:[%s122_s0] sm:$0xff]  ;;  %s41_s1 = sshll.u32 %s77_s20, 4  ;;  %s42_s1 = int_to_ptr.vmem [resolvable:$true] %s41_s1 }
   0x4   :  { %20 = vperm.xlu0 %51, %v17_v0   ;;  %s52_s2 = scalar_lea.vmem %s42_s1, 256  ;;  %p57_p1 = scmp.lt.s32.totalorder %s42_s1, %s42_s1 }
   0x5   :  { %p53_p0 = scmp.ne.s32.totalorder %s42_s1, %s52_s2  ;;  %p58_p2 = scmp.lt.s32.totalorder %s52_s2, %s52_s2 }
   0x7   :  { %p59_p3 = por %p58_p2, %p57_p1 }
   0x8   :  { %28 = vperm.xlu0 %51, %v25_v2  }
   0x9   :  { %p60_p4 = pnand %p59_p3, %p53_p0 }
  0x83   :  { %v21_v3 = vpop.permute.xlu0 %20 }
  0x84   :  { %v23_v6 = vmul.f32 %v21_v3, %v15_v4  ;;  %v24_v7 = vmul.f32 %v21_v3, %v16_v5 }
  0x87   :  { %v29_v8 = vpop.permute.xlu0 %28 }
  0x88   :  { %v31_v9 = vadd.f32 %v29_v8, %v23_v6  ;;  %v32_v10 = vadd.f32 %v29_v8, %v24_v7 }
  0x8a   :  { %33 = vst [vmem:[#allocation2] sm:$0xff] %v31_v9  ;;  %34 = vst [vmem:[#allocation2 + $0x8] sm:$0xff] %v32_v10 }
  0x8b   :  { %63 = shalt.err (!%p60_p4)
}
  0x8c   :  { %s64_s0 = scalar_lea.hbm %s125_s3, 256 }
  0x8d   :  { %p65_p5 = scmp.ne.s32.totalorder %s125_s3, %s64_s0  ;;  %p68_p6 = scmp.lt.u32.totalorder %s64_s0, %s125_s3 }
  0x8f   :  { %p70_p7 = pnand %p68_p6, %p65_p5 }
  0x91   :  { %73 = shalt.err (!%p70_p7)
}
  0x92   :  { %44 = dma.vmem_to_hbm [thread:$0]  %s42_s1, 256, %s125_s3, [#allocation3]  }
  0x93   :  { %74 = dma.done.wait [#allocation3], 256  }
  0x94   :  { %75 = vsyncadd [#allocation3], 4294967040 }
  0x95   :  { %48 = vsyncpa [#allocation3], 1 }

</bundles_post_ra>
